<compile_context>
chip_gen: v5e
topology: v5e:2x2
jax: 0.10.0
libtpu: 0.0.40
codegen_flags: <defaults>
</compile_context>

<pallas_src>
import jax
import jax.numpy as jnp
from jax.experimental import pallas as pl
from jax.experimental.pallas import tpu as pltpu


def _bbox_head_kernel(x_ref, w_ref, b_ref, o_ref):
    # x_ref: (C, thw)   NCHW-native activation tile (spatial on the lane axis)
    # w_ref: (O, C)     full 1x1-conv weight, resident across the grid
    # b_ref: (O, 1)     bias (f32), broadcast over the lane (spatial) axis
    # o_ref: (O, thw)   lane-dense output tile
    #
    # O=12 uses ~5% of the MXU M-dimension, but the kernel is memory bound by
    # >10x, so padding O would only add fill work -- keep the dot as-is.
    acc = jnp.dot(w_ref[...], x_ref[...], preferred_element_type=jnp.float32)
    o_ref[...] = (acc + b_ref[...]).astype(o_ref.dtype)


_FALLBACK_VMEM_CAP = 64 * 1024 * 1024  # v7x per-TC physical VMEM (the smallest)


def _tpu_vmem_capacity_bytes():
    """Physical per-core VMEM capacity; conservative fallback if unavailable."""
    try:
        return int(pltpu.get_tpu_info().vmem_capacity_bytes)
    except Exception:
        return _FALLBACK_VMEM_CAP


def _vmem_tile_budget_bytes(vmem_cap):
    """Budget for the double-buffered in+out tile set.

    ~3/8 of physical capacity, capped at 32 MiB:
      v7x  (64 MiB/TC)  -> 24 MiB
      v5e/v6e (128 MiB) -> 32 MiB
    leaving ample headroom for the resident weight/bias buffers and Mosaic
    internal scratch.
    """
    return int(min(vmem_cap * 3 // 8, 32 * 1024 * 1024))


def _pick_spatial_tile(hw, n, c, o, itemsize, vmem_budget_bytes):
    """Pick the lane-dense (multiple-of-128) spatial tile width.

    Largest candidate whose double-buffered x-tile + out-tile set fits the VMEM
    budget, then shrunk (if needed) so the grid has >= 4 total steps (>= 2 per
    v7x TensorCore) -- with fewer steps one core idles and there is no next
    step to prefetch against, so DMA and compute serialize.  Ragged tails are
    handled by the pl.cdiv grid (partial final block).
    """
    if hw <= 128:
        return hw                      # full-extent block is always legal
    hw_pad = pl.cdiv(hw, 128) * 128

    per_lane_bytes = 2 * (c + o) * itemsize   # double-buffered x tile + out tile
    tile = 128
    for cand in (16384, 8192, 4096, 2048, 1024, 512, 256, 128):
        if per_lane_bytes * cand <= vmem_budget_bytes:
            tile = cand
            break
    tile = min(tile, hw_pad)

    # Guarantee >= 4 total grid steps when the spatial extent allows it.
    min_steps = 4
    if n * pl.cdiv(hw, tile) < min_steps:
        want_spatial_steps = pl.cdiv(min_steps, max(n, 1))
        shrunk = max(128, pl.cdiv(pl.cdiv(hw, want_spatial_steps), 128) * 128)
        tile = min(tile, shrunk)
    return tile


def bbox_head_forward(x_nchw, weight_oc, bias_o, num_anchors, *,
                      return_native_layout=False):
    """BboxHead forward.

    x_nchw: (N, C, H, W); weight_oc: (O, C) (Conv2d weight (O,C,1,1) squeezed);
    bias_o: (O,), with O = num_anchors*4.

    Returns (N, H*W*num_anchors, 4), matching
        conv1x1(x).permute(0, 2, 3, 1).reshape(N, -1, 4),
    or, if return_native_layout=True, the lane-dense (N, O, H*W) tensor so a
    fused downstream box-decode can skip the small epilogue transpose pass.
    """
    N, C, H, W = x_nchw.shape
    O = weight_oc.shape[0]
    assert O == num_anchors * 4
    HW = H * W

    # Free reshape (collapses trailing contiguous dims): keep NCHW-native layout
    # so the kernel reads the big activation with zero extra HBM traffic.
    x_flat = x_nchw.reshape(N, C, HW)
    # Dtype contract: the kernel is dtype-agnostic.  If the producing FPN layer
    # emits bf16, the dominant C*HW read halves automatically (~1.9x on a
    # bandwidth-bound op).  We do NOT cast here (no extra HBM round trip) and we
    # do NOT downcast the conv weight -- a mixed-precision dot still accumulates
    # in f32, preserving the PyTorch f32-weight numerics.
    w = weight_oc
    b = bias_o.reshape(O, 1).astype(jnp.float32)

    itemsize = jnp.dtype(x_nchw.dtype).itemsize
    vmem_cap = _tpu_vmem_capacity_bytes()
    tile_budget = _vmem_tile_budget_bytes(vmem_cap)
    thw = _pick_spatial_tile(HW, N, C, O, itemsize, tile_budget)
    grid = (N, pl.cdiv(HW, thw))

    # Explicit scoped-VMEM limit: tile budget + headroom for the resident
    # weight/bias buffers and Mosaic internal scratch, kept inside physical.
    vmem_limit = int(min(tile_budget + 4 * 1024 * 1024,
                         max(vmem_cap - 2 * 1024 * 1024, tile_budget)))

    w_itemsize = jnp.dtype(weight_oc.dtype).itemsize
    cost = pl.CostEstimate(
        flops=2 * N * HW * C * O,
        transcendentals=0,
        bytes_accessed=itemsize * (N * C * HW + N * O * HW)
        + w_itemsize * C * O + 4 * O,
    )

    y = pl.pallas_call(
        _bbox_head_kernel,
        out_shape=jax.ShapeDtypeStruct((N, O, HW), x_nchw.dtype),
        grid_spec=pltpu.PrefetchScalarGridSpec(
            num_scalar_prefetch=0,
            grid=grid,
            in_specs=[
                # Activation tile: (C, thw), spatial on lanes (lane-dense loads).
                # If profiling ever shows exposed DMA-issue latency on the small
                # feature levels, pipeline_mode=pl.Buffered(3) is the next knob.
                pl.BlockSpec((None, C, thw), lambda n, s: (n, 0, s)),
                # Full weight / bias, constant index map -> resident in VMEM.
                pl.BlockSpec((O, C), lambda n, s: (0, 0)),
                pl.BlockSpec((O, 1), lambda n, s: (0, 0)),
            ],
            # Output tile (O, thw): lane-dense stores (thw multiple of 128).
            out_specs=pl.BlockSpec((None, O, thw), lambda n, s: (n, 0, s)),
        ),
        compiler_params=pltpu.CompilerParams(
            # Both axes independent -> shard across the 2 TensorCores on v7x.
            dimension_semantics=("parallel", "parallel"),
            vmem_limit_bytes=vmem_limit,
        ),
        cost_estimate=cost,
    )(x_flat, w, b)

    if return_native_layout:
        # Lane-dense (N, O, HW): a fused box-decode consumer can fold the
        # permute into its own indexing and skip one full HBM round trip.
        return y

    # Spec-exact epilogue on the small O=4*A-channel output:
    # (N, O, HW) -> (N, HW, O) -> (N, H*W*A, 4)  ==  permute(0,2,3,1).view(N,-1,4)
    return jnp.transpose(y, (0, 2, 1)).reshape(N, HW * num_anchors, 4)


if __name__ == "__main__":
    # Small shapes consistent with the module (in_channels scaled down).
    N, C, H, W = 2, 32, 16, 16
    num_anchors = 3
    O = num_anchors * 4

    key = jax.random.PRNGKey(0)
    kx, kw, kb = jax.random.split(key, 3)
    x = jax.random.normal(kx, (N, C, H, W), dtype=jnp.float32)
    weight = jax.random.normal(kw, (O, C), dtype=jnp.float32) * 0.05  # Conv2d weight (O,C,1,1) squeezed
    bias = jax.random.normal(kb, (O,), dtype=jnp.float32) * 0.05

    out = bbox_head_forward(x, weight, bias, num_anchors)
    out = jax.block_until_ready(out)

    # Reference check in plain JAX (same math as the PyTorch forward).
    ref = jnp.einsum("nchw,oc->nhwo", x, weight) + bias
    ref = ref.reshape(N, H * W * num_anchors, 4)
    assert out.shape == (N, H * W * num_anchors, 4), out.shape
    assert jnp.allclose(out, ref, atol=1e-4, rtol=1e-4)

    # Native-layout path (kernel output without the epilogue transpose).
    out_native = jax.block_until_ready(
        bbox_head_forward(x, weight, bias, num_anchors, return_native_layout=True))
    assert out_native.shape == (N, O, H * W), out_native.shape
    assert jnp.allclose(
        jnp.transpose(out_native, (0, 2, 1)).reshape(N, H * W * num_anchors, 4),
        ref, atol=1e-4, rtol=1e-4)

    print("KERNEL_OK")
</pallas_src>

<mosaic_0001>
module attributes {stable_mosaic.version = 11 : i64} {
  func.func @_bbox_head_kernel(%arg0: i32, %arg1: i32, %arg2: memref<1x32x128xf32, #tpu.memory_space<vmem>>, %arg3: memref<12x32xf32, #tpu.memory_space<vmem>>, %arg4: memref<12x1xf32, #tpu.memory_space<vmem>>, %arg5: memref<1x12x128xf32, #tpu.memory_space<vmem>>) attributes {dimension_semantics = [#tpu.dimension_semantics<parallel>, #tpu.dimension_semantics<parallel>], iteration_bounds = array<i64: 2, 2>, scalar_prefetch = 0 : i64, scratch_operands = 0 : i64, tpu.core_type = #tpu.core_type<tc>, window_params = [{transform_indices = @transform_0, window_bounds = array<i64: 1, 32, 128>}, {pipeline_mode = #tpu.pipeline_mode<synchronous>, transform_indices = @transform_1, window_bounds = array<i64: 12, 32>}, {pipeline_mode = #tpu.pipeline_mode<synchronous>, transform_indices = @transform_2, window_bounds = array<i64: 12, 1>}, {transform_indices = @transform_3, window_bounds = array<i64: 1, 12, 128>}]} {
    %c0 = arith.constant 0 : index
    %c0_0 = arith.constant 0 : index
    %0 = vector.load %arg3[%c0, %c0_0] : memref<12x32xf32, #tpu.memory_space<vmem>>, vector<12x32xf32>
    %c0_1 = arith.constant 0 : index
    %c0_2 = arith.constant 0 : index
    %c0_3 = arith.constant 0 : index
    %1 = vector.load %arg2[%c0_1, %c0_2, %c0_3] : memref<1x32x128xf32, #tpu.memory_space<vmem>>, vector<1x32x128xf32>
    %2 = vector.shape_cast %1 : vector<1x32x128xf32> to vector<32x128xf32>
    %cst = arith.constant dense<0.000000e+00> : vector<12x128xf32>
    %3 = tpu.matmul %0, %2, %cst {dimension_numbers = #tpu.dot_dimension_numbers<[1], [0], [0], [1], [0, 0, 1, 1], [], []>} : vector<12x32xf32>, vector<32x128xf32>, vector<12x128xf32> -> vector<12x128xf32>
    %c0_4 = arith.constant 0 : index
    %c0_5 = arith.constant 0 : index
    %4 = vector.load %arg4[%c0_4, %c0_5] : memref<12x1xf32, #tpu.memory_space<vmem>>, vector<12x1xf32>
    %5 = vector.broadcast %4 : vector<12x1xf32> to vector<12x128xf32>
    %6 = arith.addf %3, %5 : vector<12x128xf32>
    %c0_6 = arith.constant 0 : index
    %c0_7 = arith.constant 0 : index
    %c0_8 = arith.constant 0 : index
    %7 = vector.load %arg5[%c0_6, %c0_7, %c0_8] : memref<1x12x128xf32, #tpu.memory_space<vmem>>, vector<1x12x128xf32>
    %8 = vector.shape_cast %7 : vector<1x12x128xf32> to vector<12x128xf32>
    %9 = vector.shape_cast %6 : vector<12x128xf32> to vector<1x12x128xf32>
    tpu.vector_store %arg5[%c0_6, %c0_7, %c0_8], %9 {strides = array<i32>} : memref<1x12x128xf32, #tpu.memory_space<vmem>>, vector<1x12x128xf32>,
    return
  }
  func.func @transform_0(%arg0: i32, %arg1: i32) -> (i32, i32, i32) {
    %c0_i32 = arith.constant 0 : i32
    %c0_i32_0 = arith.constant 0 : i32
    return %arg0, %c0_i32, %arg1 : i32, i32, i32
  }
  func.func @transform_1(%arg0: i32, %arg1: i32) -> (i32, i32) {
    %c0_i32 = arith.constant 0 : i32
    %c0_i32_0 = arith.constant 0 : i32
    %c0_i32_1 = arith.constant 0 : i32
    return %c0_i32, %c0_i32_0 : i32, i32
  }
  func.func @transform_2(%arg0: i32, %arg1: i32) -> (i32, i32) {
    %c0_i32 = arith.constant 0 : i32
    %c0_i32_0 = arith.constant 0 : i32
    %c0_i32_1 = arith.constant 0 : i32
    return %c0_i32, %c0_i32_0 : i32, i32
  }
  func.func @transform_3(%arg0: i32, %arg1: i32) -> (i32, i32, i32) {
    %c0_i32 = arith.constant 0 : i32
    %c0_i32_0 = arith.constant 0 : i32
    return %arg0, %c0_i32, %arg1 : i32, i32, i32
  }
}

</mosaic_0001>

<bundles_post_ra>
// kernel: tpu_custom_call.1
= control target key start
LH: loop header
LB: loop body
LE: loop exit
PB: predicated region body
PF: predicated region fallthrough
CT: control target
= control target key end

     0   :  { %8 = vsyncpa [#allocation3], 0  ;;  %s738_s0 = inlined_call_operand.hbm [shape: f32[2,32,256], index: 0, kind: input, shape index: {}]   ;;  %s739_s1 = inlined_call_operand.vmem [shape: f32[12,32], index: 1, kind: input, shape index: {}]   ;;  %s740_s2 = inlined_call_operand.vmem [shape: f32[12,1], index: 2, kind: input, shape index: {}]   ;;  %s741_s3 = inlined_call_operand.vmem [shape: f32[2,12,256], index: 3, kind: output, shape index: {}]  }
   0x1   :  { %10 = vsyncpa [#allocation3 + $0x1], 0  ;;  %s598_s12 = smov 0   ;;  %s600_s13 = smov 0  }
   0x2   :  { %s602_s14 = smov 0   ;;  %s604_s15 = smov 0  }
   0x3   :  { %s606_s16 = smov 0   ;;  %s608_s17 = smov 0  }
   0x4   :  { %s610_s18 = smov 0   ;;  %s612_s19 = smov 0  }
   0x5 LB: > { %s379_s20 = sadd.s32 4294967295, %s572_s19   ;;  %s25_s21 = sadd.s32 1, %s564_s17  ;;  %s572_s19 = sphi %s612_s19, %s16_s19   ;;  %s568_s18 = sphi %s610_s18, %s754_s18   ;;  %s564_s17 = sphi %s608_s17, %s753_s17   ;;  %s560_s16 = sphi %s606_s16, %s752_s16   ;;  %s556_s15 = sphi %s604_s15, %s751_s15   ;;  %s552_s14 = sphi %s602_s14, %s750_s14   ;;  %s548_s13 = sphi %s600_s13, %s749_s13   ;;  %s544_s12 = sphi %s598_s12, %s748_s12  }
   0x6   : > { %p26_p0 = scmp.ge.s32.totalorder %s25_s21, 2  ;;  %s28_s22 = sadd.s32 1, %s568_s18 }
   0x7   : > { %s37_s23 = sadd.s32 1, %s552_s14  ;;  %p44_p1 = scmp.ne.s32.totalorder %s552_s14, %s548_s13 }
   0x8   : > { %s756_s21 = smov (%p26_p0, %s25_s21), 0  ;;  %s758_s22 = smov (!%p26_p0, %s28_s22), %s568_s18 }
   0x9   : > { %s33_s24 = ssub.s32 %s564_s17, %s756_s21  ;;  %p45_p2 = scmp.eq.s32.totalorder %s572_s19, 0 }
   0xa   : > { %p30_p3 = scmp.ge.s32.totalorder %s758_s22, 2  ;;  %p50_p4 = scmp.ne.s32.totalorder %s548_s13, %s544_s12 }
   0xb   : > { %p652_p5 = por %p45_p2, %p44_p1  ;;  %p51_p6 = scmp.eq.s32.totalorder %s379_s20, 0 }
   0xc   : > { %s760_s22 = smov (%p30_p3, %s758_s22), 0  ;;  %p118_p8 = scmp.eq.s32.totalorder %s379_s20, 3 }
   0xd   : > { %744 = sst [smem:[#allocation6_spill]] %s760_s22  ;;  %p658_p7 = por %p51_p6, %p50_p4 }
   0xe   : > { %s32_s27 = ssub.s32 %s568_s18, %s760_s22  ;;  %p667_p9 = por %p118_p8, %p44_p1 }
   0xf   : > { %s34_s28 = sor.u32 %s33_s24, %s32_s27  ;;  %p406_p11 = scmp.lt.s32.totalorder %s572_s19, 4 }
  0x10   : > { %p35_p10 = scmp.eq.s32.totalorder %s34_s28, 0  ;;  %s150_s30 = sand.u32 1, %s552_s14  }
  0x11   : > { %s384_s4 = sshll.u32 %s568_s18, 3  ;;  %s383_s6 = sshll.u32 %s150_s30, 5 }
  0x12   : > { %s675_s5 = scalar_select %p35_p10, %s552_s14, %s37_s23  }
  0x13   : > { %s158_s7 = sadd.s32 %s564_s17, %s384_s4  ;;  %s154_s9 = scalar_lea.vmem [#allocation2], %s383_s6 }
  0x14   : > { %s385_s8 = sshll.u32 %s158_s7, 3  ;;  %s163_s10 = sshll.u32 %s154_s9, 4  ;;  %s164_s10 = int_to_ptr.vmem [resolvable:$true] %s163_s10 }
  0x15   : > { %s160_s20 = scalar_lea.hbm %s738_s0, %s385_s8  ;;  %p403_p12 = pnand %p406_p11, %p652_p5 }
  0x16   : > { %s161_s24 = sshll.u32 %s160_s20, 4  ;;  %p386_p13 = scmp.ge.s32.totalorder %s572_s19, 1  ;;  %s162_s24 = int_to_ptr.hbm [resolvable:$true] %s161_s24 }
  0x17   : > { %s151_s27 = scalar_lea.sflag [#allocation3], %s150_s30  ;;  %s574_s28 = smov 256  }
  0x18   : > { %s575_s23 = smov 128   ;;  %s576_s22 = smov 8  }
  0x19   : > { %405 = dma.hbm_to_vmem [thread:$0]  (!%p403_p12), %s162_s24, 512, %s164_s10, %s151_s27, %s574_s28, %s575_s23, %s576_s22  }
  0x1a   : > { %p171_p0 = scmp.lt.s32.totalorder %s572_s19, 5 }
  0x1c   : > { %p172_p1 = pnand %p386_p13, %p171_p0 }
  0x1d   : > { %s686_s4 = sand.u32 (!%p172_p1), 1, %s548_s13  }
  0x1e   : > { %175 = sbr.rel (%p172_p1) target bundleno = 182 (0xb6), region = 32  ;;  %s387_s6 = sshll.u32 (!%p172_p1), %s686_s4, 5 }
  0x1f   : > { %s178_s7 = scalar_lea.sflag (!%p172_p1), [#allocation3], %s686_s4  ;;  %s181_s25 = scalar_lea.vmem (!%p172_p1), [#allocation2], %s387_s6 }
  0x23   : > { %539 = dma.done.wait (%p658_p7), %s178_s7, 512  }
  0x24   : > { %541 = vsyncadd (%p658_p7), %s178_s7, 4294966784  ;;  %v577_v0 = vmov 0   ;;  %v209_v1 = vld [vmem:[%s181_s25 + $0x18] sm:$0xff]  ;;  %v210_v2 = vld [vmem:[%s740_s2] sm:$0xff]  ;;  %vm222_vm0 = vcmask 261120   ;;  %s388_s20 = sshll.u32 %s686_s4, 4 }
  0x25   : > { %475 = vset.pattern.permute.xlu0 %v577_v0  ;;  %v208_v3 = vld [vmem:[%s181_s25 + $0x10] sm:$0xff]  ;;  %241 = vmatpush.msra.mxu0 %v209_v1  ;;  %v207_v4 = vld [vmem:[%s181_s25 + $0x8] sm:$0xff]  ;;  %v206_v5 = vld [vmem:[%s181_s25] sm:$0xff]  ;;  %s203_s24 = scalar_lea.vmem [#allocation4], %s388_s20  ;;  %s392_s27 = sshll.u32 (%p667_p9), %s560_s16, 2 }
  0x26   : > { %396 = vmatpush.msra.mxu1 %v209_v1  ;;  %214 = vperm.xlu0 %475, %v210_v2   ;;  %v204_v6 = vld [vmem:[%s739_s1] sm:$0xff]  ;;  %v205_v7 = vld [vmem:[%s739_s1 + $0x8] sm:$0xf]  ;;  %s262_s28 = sadd.s32 (%p667_p9), %s556_s15, %s392_s27 }
  0x27   : > { %242 = vmatpush.msra.mxu0 %v208_v3  ;;  %v211_v8 = vld [vmem:[%s740_s2 + $0x8] sm:$0xf]  ;;  %s393_s23 = sshll.u32 (%p667_p9), %s262_s28, 3 }
  0x28   : > { %397 = vmatpush.msra.mxu1 %v208_v3  ;;  %s264_s7 = scalar_lea.vmem (%p667_p9), %s741_s3, %s393_s23 }
  0x29   : > { %243 = vmatpush.msra.mxu0 %v207_v4 }
  0x2a   : > { %398 = vmatpush.msra.mxu1 %v207_v4 }
  0x2b   : > { %244 = vmatpush.msra.mxu0 %v206_v5 }
  0x2c   : > { %399 = vmatpush.msra.mxu1 %v206_v5  ;;  %389 = vmatmul.msk.f32.vlgmr.msra.gmra.mxu0 %vm222_vm0, %v204_v6 }
  0x2d   : > { %390 = vmatmul.msk.f32.vlgmr.msra.gmra.mxu1 %vm222_vm0, %v205_v7 }
  0x2e   : > { %219 = vperm.xlu0 %475, %v211_v8  }
  0x98   : > { %v215_v9 = vpop.permute.xlu0 %214 }
  0xa0   : > { %v220_v10 = vpop.permute.xlu0 %219 }
  0xa9   : > { %v246_v11 = vpop.f32.mrf.mxu0  ;;  %260 = sbr.rel (!%p667_p9) target bundleno = 182 (0xb6), region = 40 }
  0xaa   : > { %v249_v12 = vpop.f32.mrf.mxu1  ;;  %v247_v13 = vadd.f32 %v246_v11, %v215_v9 }
  0xab   : > { %v250_v14 = vadd.f32 %v249_v12, %v220_v10 }
  0xac   : > { %252 = vst [vmem:[%s203_s24] sm:$0xff] %v247_v13 }
  0xad   : > { %253 = vst [vmem:[%s203_s24 + $0x8] sm:$0xf] %v250_v14 }
  0xb3   : > { %v295_v15 = vld [vmem:[%s203_s24] sm:$0xff] }
  0xb4   : > { %v297_v16 = vld [vmem:[%s203_s24 + $0x8] sm:$0xff]  ;;  %296 = vst [vmem:[%s264_s7] sm:$0xff] %v295_v15 }
  0xb5   : > { %298 = vst [vmem:[%s264_s7 + $0x10] sm:$0xff] %v297_v16 }
  0xb6 PF: > { %s16_s19 = sadd.s32 1, %s572_s19   ;;  %s747_s29 = sld [smem:[#allocation6_spill]] }
  0xb7   : > { %p13_p2 = scmp.ge.s32.totalorder %s16_s19, 6   ;;  %s748_s12 = smov %s548_s13 }
  0xb8   : > { %s749_s13 = smov %s552_s14  ;;  %s750_s14 = smov %s675_s5 }
  0xb9   : > { %s751_s15 = smov %s564_s17  ;;  %s752_s16 = smov %s568_s18 }
  0xba   : > { %s753_s17 = smov %s756_s21  ;;  %15 = sbr.rel (!%p13_p2) target bundleno = 5 (0x5), region = 110 }
  0xbc   : > { %s754_s18 = smov %s747_s29 }
  0xbf   :  { %314 = vsyncpa [#allocation3], 1 }
  0xc0   :  { %316 = vsyncpa [#allocation3 + $0x1], 1 }

</bundles_post_ra>
